<compile_context>
chip_gen: v5e
topology: v5e:2x2
jax: 0.10.0
libtpu: 0.0.40
codegen_flags: <defaults>
</compile_context>

<pallas_src>
import math
import jax
import jax.numpy as jnp
from jax import lax
from jax.experimental import pallas as pl
from jax.experimental.pallas import tpu as pltpu


def _pick_time_block(T, max_blk=16):
    """Largest divisor of T that is <= max_blk (amortizes grid-step overhead)."""
    for d in range(min(T, max_blk), 0, -1):
        if T % d == 0:
            return d
    return 1


# ---------------------------------------------------------------------------
# Kernel 1: hoisted input projection   P = x @ W_ih^T + (b_ih + b_hh)
# One large matmul per time-block (M = T_BLK * B rows for the MXU).
# ---------------------------------------------------------------------------
def _input_proj_kernel(x_ref, wih_ref, b_ref, p_ref):
    t_blk, B, In = x_ref.shape
    H4 = wih_ref.shape[1]
    x2 = x_ref[...].reshape(t_blk * B, In)            # merge leading dims: tall M
    p = jnp.dot(x2.astype(wih_ref.dtype), wih_ref[...],
                preferred_element_type=jnp.float32)
    p = p + b_ref[...]                                # bias folded in exactly once
    p_ref[...] = p.reshape(t_blk, B, H4).astype(p_ref.dtype)


def _input_projection(x, wih_t, b, t_blk):
    """x: (T, B, In), wih_t: (In, 4H) == W_ih.T, b: (1, 4H). Returns P: (T, B, 4H) f32."""
    T, B, In = x.shape
    H4 = wih_t.shape[1]
    assert T % t_blk == 0

    cost = pl.CostEstimate(
        flops=2 * T * B * In * H4,
        transcendentals=0,
        bytes_accessed=(x.size * x.dtype.itemsize
                        + wih_t.size * wih_t.dtype.itemsize
                        + b.size * 4 + T * B * H4 * 4),
    )
    return pl.pallas_call(
        _input_proj_kernel,
        out_shape=jax.ShapeDtypeStruct((T, B, H4), jnp.float32),
        grid_spec=pltpu.PrefetchScalarGridSpec(
            num_scalar_prefetch=0,
            grid=(T // t_blk,),
            in_specs=[
                pl.BlockSpec((t_blk, B, In), lambda t: (t, 0, 0)),   # x time-block
                pl.BlockSpec((In, H4), lambda t: (0, 0)),            # W_ih^T resident
                pl.BlockSpec((1, H4), lambda t: (0, 0)),             # fused bias
            ],
            out_specs=pl.BlockSpec((t_blk, B, H4), lambda t: (t, 0, 0)),
        ),
        compiler_params=pltpu.CompilerParams(
            dimension_semantics=("parallel",),     # time-blocks independent here
            vmem_limit_bytes=32 * 1024 * 1024,
        ),
        cost_estimate=cost,
    )(x, wih_t, b)


# ---------------------------------------------------------------------------
# Kernel 2: sequential LSTM recurrence over time-blocks.
# grid = (T // T_BLK,), "arbitrary" (true recurrence). h/c live in VMEM scratch
# across grid steps; within a block they are loop-carried in registers.
# ---------------------------------------------------------------------------
def _lstm_recurrence_kernel(p_ref, whh_ref, y_ref, h_scr, c_scr):
    tb = pl.program_id(0)

    @pl.when(tb == 0)
    def _init():
        h_scr[...] = jnp.zeros_like(h_scr)   # PyTorch default h0 = 0
        c_scr[...] = jnp.zeros_like(c_scr)   # PyTorch default c0 = 0

    T_BLK = p_ref.shape[0]
    H = h_scr.shape[-1]
    whh = whh_ref[...]                       # W_hh^T, VMEM-resident across the grid

    def step(i, carry):
        h, c = carry                         # h in weight dtype, c in f32
        gates = p_ref[i].astype(jnp.float32) + jnp.dot(
            h, whh, preferred_element_type=jnp.float32)        # (B, 4H) f32
        i_g = jax.nn.sigmoid(gates[:, 0 * H:1 * H])            # gate order i,f,g,o
        f_g = jax.nn.sigmoid(gates[:, 1 * H:2 * H])
        g_g = jnp.tanh(gates[:, 2 * H:3 * H])
        o_g = jax.nn.sigmoid(gates[:, 3 * H:4 * H])
        c_new = f_g * c + i_g * g_g
        h_new = o_g * jnp.tanh(c_new)
        y_ref[i] = h_new.astype(y_ref.dtype)
        return (h_new.astype(h.dtype), c_new)

    h_fin, c_fin = lax.fori_loop(0, T_BLK, step,
                                 (h_scr[...], c_scr[...]), unroll=True)
    h_scr[...] = h_fin
    c_scr[...] = c_fin


def _lstm_recurrence(p, whh_t, t_blk, out_dtype):
    """p: (T, B, 4H) f32 precomputed projection, whh_t: (H, 4H) == W_hh.T."""
    T, B, H4 = p.shape
    H = H4 // 4
    assert whh_t.shape == (H, H4) and T % t_blk == 0

    cost = pl.CostEstimate(
        flops=2 * T * B * H * H4 + 10 * T * B * H,
        transcendentals=4 * T * B * H,
        bytes_accessed=(p.size * 4 + whh_t.size * whh_t.dtype.itemsize
                        + T * B * H * jnp.dtype(out_dtype).itemsize),
    )
    return pl.pallas_call(
        _lstm_recurrence_kernel,
        out_shape=jax.ShapeDtypeStruct((T, B, H), out_dtype),
        grid_spec=pltpu.PrefetchScalarGridSpec(
            num_scalar_prefetch=0,
            grid=(T // t_blk,),
            in_specs=[
                pl.BlockSpec((t_blk, B, H4), lambda t: (t, 0, 0)),   # P time-block
                pl.BlockSpec((H, H4), lambda t: (0, 0)),             # W_hh^T resident
            ],
            out_specs=pl.BlockSpec((t_blk, B, H), lambda t: (t, 0, 0)),
            scratch_shapes=[
                pltpu.VMEM((B, H), whh_t.dtype),   # h state in matmul-operand dtype
                pltpu.VMEM((B, H), jnp.float32),   # c state stays f32
            ],
        ),
        compiler_params=pltpu.CompilerParams(
            # Time axis is a true recurrence -> must be sequential.
            dimension_semantics=("arbitrary",),
            vmem_limit_bytes=32 * 1024 * 1024,
        ),
        cost_estimate=cost,
    )(p, whh_t)


def rnncustom_forward(x, params, param_dtype=None, max_time_block=16):
    """Equivalent of RNNcustom.forward with rnn='lstm'.

    x: (T, B, H); dim 0 is the axis nn.LSTM scans (batch_first=False), dim 1 is
       nn.LSTM's batch axis — exactly how the PyTorch module uses it.
    params: list of (wih_t, whh_t, b) per layer, with wih_t = W_ih.T (In, 4H),
            whh_t = W_hh.T (H, 4H), b = (b_ih + b_hh) reshaped (1, 4H).
    param_dtype: optional (e.g. jnp.bfloat16 on v6e/v7x) — weights & MXU
                 operands run in this dtype, accumulation/c-state stay f32.
    Returns output[:, -1, :] -> shape (T, H).
    """
    T = x.shape[0]
    t_blk = _pick_time_block(T, max_time_block)
    y = x
    for (wih_t, whh_t, b) in params:
        if param_dtype is not None:
            wih_t = wih_t.astype(param_dtype)
            whh_t = whh_t.astype(param_dtype)
        p = _input_projection(y, wih_t, b, t_blk)     # hoisted big matmul
        y = _lstm_recurrence(p, whh_t, t_blk, x.dtype)
    return y[:, -1, :]


def _lstm_reference(x, params):
    """Pure-JAX reference (identical math to PyTorch nn.LSTM, h0=c0=0)."""
    y = x
    for (wih_t, whh_t, b) in params:
        T, B, _ = y.shape
        H = whh_t.shape[0]
        h = jnp.zeros((B, H), jnp.float32)
        c = jnp.zeros((B, H), jnp.float32)
        outs = []
        for t in range(T):
            gates = y[t].astype(jnp.float32) @ wih_t + h @ whh_t + b
            i_g = jax.nn.sigmoid(gates[:, 0:H])
            f_g = jax.nn.sigmoid(gates[:, H:2 * H])
            g_g = jnp.tanh(gates[:, 2 * H:3 * H])
            o_g = jax.nn.sigmoid(gates[:, 3 * H:4 * H])
            c = f_g * c + i_g * g_g
            h = o_g * jnp.tanh(c)
            outs.append(h)
        y = jnp.stack(outs, axis=0).astype(x.dtype)
    return y[:, -1, :]


if __name__ == "__main__":
    # Small config consistent with the module: hidden_size=32, num_hidden_layers=2,
    # rnn='lstm'.  x: (8, 8, 32) — dim 0 (=8) is the scanned axis, dim 1 (=8) the
    # batch axis (batch_first=False).  max_time_block=4 gives grid=(2,) so the
    # h/c state carry across grid steps is exercised at demo scale.
    T, B, H = 8, 8, 32
    H4 = 4 * H
    NUM_LAYERS = 2

    key = jax.random.PRNGKey(0)
    kx, *kp = jax.random.split(key, 1 + 3 * NUM_LAYERS)
    x = jax.random.normal(kx, (T, B, H), dtype=jnp.float32)

    scale = 1.0 / math.sqrt(H)
    params = []
    for l in range(NUM_LAYERS):
        kw1, kw2, kb = kp[3 * l:3 * l + 3]
        wih_t = jax.random.normal(kw1, (H, H4), dtype=jnp.float32) * scale  # = W_ih.T
        whh_t = jax.random.normal(kw2, (H, H4), dtype=jnp.float32) * scale  # = W_hh.T
        b = jax.random.normal(kb, (1, H4), dtype=jnp.float32) * scale       # = b_ih + b_hh
        params.append((wih_t, whh_t, b))

    y = rnncustom_forward(x, params, max_time_block=4)
    y = jax.block_until_ready(y)

    y_ref = _lstm_reference(x, params)
    assert y.shape == (T, H)
    assert jnp.allclose(y, y_ref, atol=1e-4, rtol=1e-4), float(jnp.max(jnp.abs(y - y_ref)))

    print("KERNEL_OK")
</pallas_src>

<mosaic_0001>
module attributes {stable_mosaic.version = 11 : i64} {
  func.func @_input_proj_kernel(%arg0: i32, %arg1: memref<4x8x32xf32, #tpu.memory_space<vmem>>, %arg2: memref<32x128xf32, #tpu.memory_space<vmem>>, %arg3: memref<1x128xf32, #tpu.memory_space<vmem>>, %arg4: memref<4x8x128xf32, #tpu.memory_space<vmem>>) attributes {dimension_semantics = [#tpu.dimension_semantics<parallel>], iteration_bounds = array<i64: 2>, scalar_prefetch = 0 : i64, scratch_operands = 0 : i64, tpu.core_type = #tpu.core_type<tc>, window_params = [{transform_indices = @transform_0, window_bounds = array<i64: 4, 8, 32>}, {pipeline_mode = #tpu.pipeline_mode<synchronous>, transform_indices = @transform_1, window_bounds = array<i64: 32, 128>}, {pipeline_mode = #tpu.pipeline_mode<synchronous>, transform_indices = @transform_2, window_bounds = array<i64: 1, 128>}, {transform_indices = @transform_3, window_bounds = array<i64: 4, 8, 128>}]} {
    %c0 = arith.constant 0 : index
    %c0_0 = arith.constant 0 : index
    %c0_1 = arith.constant 0 : index
    %0 = vector.load %arg1[%c0, %c0_0, %c0_1] : memref<4x8x32xf32, #tpu.memory_space<vmem>>, vector<4x8x32xf32>
    %1 = vector.shape_cast %0 : vector<4x8x32xf32> to vector<32x32xf32>
    %c0_2 = arith.constant 0 : index
    %c0_3 = arith.constant 0 : index
    %2 = vector.load %arg2[%c0_2, %c0_3] : memref<32x128xf32, #tpu.memory_space<vmem>>, vector<32x128xf32>
    %cst = arith.constant dense<0.000000e+00> : vector<32x128xf32>
    %3 = tpu.matmul %1, %2, %cst {dimension_numbers = #tpu.dot_dimension_numbers<[1], [0], [0], [1], [0, 0, 1, 1], [], []>} : vector<32x32xf32>, vector<32x128xf32>, vector<32x128xf32> -> vector<32x128xf32>
    %c0_4 = arith.constant 0 : index
    %c0_5 = arith.constant 0 : index
    %4 = vector.load %arg3[%c0_4, %c0_5] : memref<1x128xf32, #tpu.memory_space<vmem>>, vector<1x128xf32>
    %5 = vector.broadcast %4 : vector<1x128xf32> to vector<32x128xf32>
    %6 = arith.addf %3, %5 : vector<32x128xf32>
    %7 = vector.shape_cast %6 : vector<32x128xf32> to vector<4x8x128xf32>
    %c0_6 = arith.constant 0 : index
    %c0_7 = arith.constant 0 : index
    %c0_8 = arith.constant 0 : index
    %8 = vector.load %arg4[%c0_6, %c0_7, %c0_8] : memref<4x8x128xf32, #tpu.memory_space<vmem>>, vector<4x8x128xf32>
    tpu.vector_store %arg4[%c0_6, %c0_7, %c0_8], %7 {strides = array<i32>} : memref<4x8x128xf32, #tpu.memory_space<vmem>>, vector<4x8x128xf32>,
    return
  }
  func.func @transform_0(%arg0: i32) -> (i32, i32, i32) {
    %c0_i32 = arith.constant 0 : i32
    %c0_i32_0 = arith.constant 0 : i32
    %c0_i32_1 = arith.constant 0 : i32
    return %arg0, %c0_i32, %c0_i32_0 : i32, i32, i32
  }
  func.func @transform_1(%arg0: i32) -> (i32, i32) {
    %c0_i32 = arith.constant 0 : i32
    %c0_i32_0 = arith.constant 0 : i32
    %c0_i32_1 = arith.constant 0 : i32
    return %c0_i32, %c0_i32_0 : i32, i32
  }
  func.func @transform_2(%arg0: i32) -> (i32, i32) {
    %c0_i32 = arith.constant 0 : i32
    %c0_i32_0 = arith.constant 0 : i32
    %c0_i32_1 = arith.constant 0 : i32
    return %c0_i32, %c0_i32_0 : i32, i32
  }
  func.func @transform_3(%arg0: i32) -> (i32, i32, i32) {
    %c0_i32 = arith.constant 0 : i32
    %c0_i32_0 = arith.constant 0 : i32
    %c0_i32_1 = arith.constant 0 : i32
    return %arg0, %c0_i32, %c0_i32_0 : i32, i32, i32
  }
}

</mosaic_0001>

<bundles_post_ra>
// kernel: tpu_custom_call.1
= control target key start
LH: loop header
LB: loop body
LE: loop exit
PB: predicated region body
PF: predicated region fallthrough
CT: control target
= control target key end

     0   :  { %8 = vsyncpa [#allocation3], 0  ;;  %s771_s0 = inlined_call_operand.hbm [shape: f32[8,8,32], index: 0, kind: input, shape index: {}]   ;;  %s772_s1 = inlined_call_operand.hbm [shape: f32[32,128], index: 1, kind: input, shape index: {}]   ;;  %s773_s2 = inlined_call_operand.vmem [shape: f32[1,128], index: 2, kind: input, shape index: {}]   ;;  %s774_s3 = inlined_call_operand.hbm [shape: f32[8,8,128], index: 3, kind: output, shape index: {}]  }
   0x1   :  { %10 = vsyncpa [#allocation3 + $0x1], 0 }
   0x2   :  { %11 = vsyncpa [#allocation6], 0 }
   0x3   :  { %12 = vsyncpa [#allocation4], 0 }
   0x4   :  { %14 = vsyncpa [#allocation4 + $0x1], 0  ;;  %s620_s12 = smov 0   ;;  %s622_s13 = smov 0  }
   0x5   :  { %s624_s14 = smov 0   ;;  %s626_s15 = smov 0  }
   0x6 LB: > { %s641_s16 = sadd.s32 4294967295, %s593_s15   ;;  %s367_s17 = sadd.s32 4294967294, %s593_s15   ;;  %s593_s15 = sphi %s626_s15, %s784_s15   ;;  %s589_s14 = sphi %s624_s14, %s783_s14   ;;  %s585_s13 = sphi %s622_s13, %s782_s13   ;;  %s581_s12 = sphi %s620_s12, %s781_s12  }
   0x7   : > { %p40_p0 = scmp.ne.s32.totalorder %s585_s13, %s581_s12  ;;  %p41_p1 = scmp.eq.s32.totalorder %s641_s16, 0 }
   0x8   : > { %p106_p2 = scmp.eq.s32.totalorder %s641_s16, 1  ;;  %p112_p3 = scmp.eq.s32.totalorder %s367_s17, 1 }
   0x9   : > { %p650_p4 = por %p41_p1, %p40_p0  ;;  %p368_p5 = scmp.ge.s32.totalorder %s593_s15, 1 }
   0xa   : > { %p655_p6 = por %p112_p3, %p40_p0  ;;  %p119_p7 = scmp.lt.s32.totalorder %s593_s15, 3 }
   0xb   : > { %s130_s22 = sshll.u32 %s772_s1, 4  ;;  %s595_s24 = smov [#allocation5]   ;;  %s131_s22 = int_to_ptr.hbm [resolvable:$true] %s130_s22 }
   0xc   : > { %p663_p8 = pnand %p368_p5, %p119_p7  ;;  %s132_s25 = sshll.u32 %s595_s24, 4  ;;  %s133_s25 = int_to_ptr.vmem [resolvable:$true] %s132_s25 }
   0xd   : > { %s673_s26 = sadd.s32 1, %s593_s15   ;;  %s596_s27 = smov 128  }
   0xe   : > { %p409_p9 = pneg %p663_p8  ;;  %s597_s28 = smov 8  }
   0xf   : > { %s24_s29 = ssub.s32 %s593_s15, %s673_s26  ;;  %s27_s30 = sadd.s32 1, %s589_s14 }
  0x10   : > { %p410_p10 = pnand %p409_p9, %p41_p1  ;;  %p25_p12 = scmp.eq.s32.totalorder %s24_s29, 0 }
  0x11   : > { %p34_p13 = scmp.ne.s32.totalorder %s589_s14, %s585_s13  ;;  %p35_p0 = scmp.eq.s32.totalorder %s593_s15, 0 }
  0x12   : > { %412 = dma.hbm_to_vmem [thread:$0]  (!%p410_p10), %s131_s22, 512, %s133_s25, [#allocation6], %s596_s27, %s596_s27, %s597_s28  }
  0x13   : > { %s685_s4 = scalar_select %p25_p12, %s589_s14, %s27_s30  }
  0x14   : > { %p689_p3 = por %p106_p2, %p34_p13  ;;  %p422_p5 = scmp.lt.s32.totalorder %s593_s15, 2 }
  0x15   : > { %s149_s6 = sand.u32 1, %s589_s14   ;;  %s387_s7 = sshll.u32 %s593_s15, 5 }
  0x16   : > { %p36_p7 = por %p35_p0, %p34_p13  ;;  %s371_s8 = sshll.u32 %s149_s6, 5 }
  0x17   : > { %s158_s11 = scalar_lea.hbm %s771_s0, %s387_s7  ;;  %s153_s20 = scalar_lea.vmem [#allocation2], %s371_s8 }
  0x18   : > { %s159_s17 = sshll.u32 %s158_s11, 4  ;;  %s161_s21 = sshll.u32 %s153_s20, 4  ;;  %s160_s17 = int_to_ptr.hbm [resolvable:$true] %s159_s17  ;;  %s162_s21 = int_to_ptr.vmem [resolvable:$true] %s161_s21 }
  0x19   : > { %p699_p9 = pnand %p422_p5, %p36_p7  ;;  %s150_s24 = scalar_lea.sflag [#allocation3], %s149_s6 }
  0x1a   : > { %s493_s25 = sshra.s32 %s160_s17, 4  ;;  %s500_s8 = scalar_lea.hbm %s771_s0, 64  ;;  %s494_s25 = int_to_ptr.hbm [resolvable:$true] %s493_s25 }
  0x1b   : > { %s495_s29 = scalar_lea.hbm %s494_s25, 32  ;;  %p497_p10 = pneg %p699_p9 }
  0x1c   : > { %p496_p2 = scmp.ne.s32.totalorder %s494_s25, %s495_s29  ;;  %p501_p0 = scmp.lt.s32.totalorder %s494_s25, %s771_s0 }
  0x1d   : > { %p502_p5 = scmp.lt.s32.totalorder %s500_s8, %s495_s29 }
  0x1e   : > { %p498_p12 = pnand %p497_p10, %p496_p2 }
  0x1f   : > { %p503_p7 = por %p502_p5, %p501_p0 }
  0x20   : > { %p499_p13 = pneg %p498_p12 }
  0x22   : > { %p504_p11 = pnand %p503_p7, %p499_p13 }
  0x24   : > { %507 = shalt.err (!%p504_p11)
}
  0x25   : > { %416 = dma.hbm_to_vmem [thread:$0]  (!%p699_p9), %s160_s17, 512, %s162_s21, %s150_s24, %s596_s27, %s596_s27, %s597_s28  }
  0x26   : > { %173 = sbr.rel (%p663_p8) target bundleno = 193 (0xc1), region = 32  ;;  %s719_s6 = sand.u32 (!%p663_p8), 1, %s585_s13  }
  0x27   : > { %s375_s11 = sshll.u32 (!%p663_p8), %s719_s6, 5  ;;  %s176_s20 = scalar_lea.sflag (!%p663_p8), [#allocation3], %s719_s6 }
  0x28   : > { %s179_s25 = scalar_lea.vmem (!%p663_p8), [#allocation2], %s375_s11 }
  0x2b   : > { %568 = dma.done.wait (%p650_p4), %s176_s20, 512  }
  0x2c   : > { %570 = vsyncadd (%p650_p4), %s176_s20, 4294966784 }
  0x2d   : > { %572 = dma.done.wait (%p41_p1), [#allocation6], 512  }
  0x2e   : > { %574 = vsyncadd (%p41_p1), [#allocation6], 4294966784  ;;  %v217_v0 = vld [vmem:[#allocation5 + $0x18] sm:$0xff]  ;;  %v216_v1 = vld [vmem:[#allocation5 + $0x10] sm:$0xff]  ;;  %vm222_vm0 = vcmask 261120   ;;  %s388_s18 = sshll.u32 %s641_s16, 5 }
  0x2f   : > { %390 = vmatpush.msra.mxu2 %v217_v0  ;;  %391 = vmatpush.msra.mxu3 %v217_v0  ;;  %v215_v2 = vld [vmem:[#allocation5 + $0x8] sm:$0xff]  ;;  %v214_v3 = vld [vmem:[#allocation5] sm:$0xff]  ;;  %v212_v4 = vld [vmem:[%s179_s25 + $0x10] sm:$0xff]  ;;  %s280_s21 = scalar_lea.hbm %s774_s3, %s388_s18  ;;  %s207_s22 = scalar_lea.vmem [#allocation7], %s375_s11 }
  0x30   : > { %247 = vmatpush.msra.mxu0 %v217_v0  ;;  %389 = vmatpush.msra.mxu1 %v217_v0  ;;  %v213_v5 = vld [vmem:[%s179_s25 + $0x18] sm:$0xff]  ;;  %v210_v6 = vld [vmem:[%s179_s25] sm:$0xff]  ;;  %v211_v7 = vld [vmem:[%s179_s25 + $0x8] sm:$0xff]  ;;  %s281_s24 = sshll.u32 %s207_s22, 4  ;;  %s283_s29 = sshll.u32 %s280_s21, 4  ;;  %s282_s24 = int_to_ptr.vmem [resolvable:$true] %s281_s24  ;;  %s284_s29 = int_to_ptr.hbm [resolvable:$true] %s283_s29 }
  0x31   : > { %393 = vmatpush.msra.mxu2 %v216_v1  ;;  %394 = vmatpush.msra.mxu3 %v216_v1  ;;  %v462_v8 = vld [vmem:[%s773_s2] ss:$0 sm:$0xff]  ;;  %s269_s16 = scalar_lea.sflag [#allocation4], %s719_s6  ;;  %s537_s30 = sshra.s32 %s284_s29, 4  ;;  %s538_s30 = int_to_ptr.hbm [resolvable:$true] %s537_s30 }
  0x32   : > { %248 = vmatpush.msra.mxu0 %v216_v1  ;;  %392 = vmatpush.msra.mxu1 %v216_v1  ;;  %s539_s7 = scalar_lea.hbm %s538_s30, 32  ;;  %s543_s10 = scalar_lea.hbm %s774_s3, 64 }
  0x33   : > { %396 = vmatpush.msra.mxu2 %v215_v2  ;;  %397 = vmatpush.msra.mxu3 %v215_v2  ;;  %p540_p1 = scmp.ne.s32.totalorder %s538_s30, %s539_s7  ;;  %p544_p11 = scmp.lt.s32.totalorder %s538_s30, %s774_s3 }
  0x34   : > { %249 = vmatpush.msra.mxu0 %v215_v2  ;;  %395 = vmatpush.msra.mxu1 %v215_v2  ;;  %p545_p9 = scmp.lt.s32.totalorder %s543_s10, %s539_s7 }
  0x35   : > { %399 = vmatpush.msra.mxu2 %v214_v3  ;;  %400 = vmatpush.msra.mxu3 %v214_v3  ;;  %p541_p4 = pnand %p540_p1, %p689_p3 }
  0x36   : > { %380 = vmatmul.msk.f32.vlgmr.msra.gmra.mxu2 %vm222_vm0, %v212_v4  ;;  %381 = vmatmul.msk.f32.vlgmr.msra.gmra.mxu3 %vm222_vm0, %v213_v5  ;;  %p546_p2 = por %p545_p9, %p544_p11 }
  0x37   : > { %250 = vmatpush.msra.mxu0 %v214_v3  ;;  %398 = vmatpush.msra.mxu1 %v214_v3  ;;  %p542_p8 = pneg %p541_p4 }
  0x38   : > { %378 = vmatmul.msk.f32.vlgmr.msra.gmra.mxu0 %vm222_vm0, %v210_v6  ;;  %379 = vmatmul.msk.f32.vlgmr.msra.gmra.mxu1 %vm222_vm0, %v211_v7 }
  0x39   : > { %p547_p10 = pnand %p546_p2, %p542_p8 }
  0xb5   : > { %v252_v9 = vpop.f32.mrf.mxu0  ;;  %v255_v10 = vpop.f32.mrf.mxu1 }
  0xb6   : > { %v253_v11 = vadd.f32 %v462_v8, %v252_v9  ;;  %v256_v12 = vadd.f32 %v462_v8, %v255_v10 }
  0xb8   : > { %264 = vst [vmem:[%s207_s22] sm:$0xff] %v253_v11 }
  0xb9   : > { %265 = vst [vmem:[%s207_s22 + $0x8] sm:$0xff] %v256_v12  ;;  %v258_v13 = vpop.f32.mrf.mxu2  ;;  %v261_v14 = vpop.f32.mrf.mxu3 }
  0xba   : > { %v259_v15 = vadd.f32 %v462_v8, %v258_v13  ;;  %v262_v16 = vadd.f32 %v462_v8, %v261_v14 }
  0xbc   : > { %266 = vst [vmem:[%s207_s22 + $0x10] sm:$0xff] %v259_v15 }
  0xbd   : > { %267 = vst [vmem:[%s207_s22 + $0x18] sm:$0xff] %v262_v16 }
  0xbe   : > { %550 = shalt.err (!%p547_p10)
}
  0xbf   : > { %s598_s6 = smov 128   ;;  %s599_s25 = smov 8  }
  0xc0   : > { %407 = dma.vmem_to_hbm [thread:$0]  (%p689_p3), %s282_s24, 512, %s284_s29, %s269_s16, %s598_s6, %s598_s6, %s599_s25  }
  0xc1 PF: > { %s298_s18 = sand.u32 1, %s581_s12   ;;  %p780_p12 = scmp.ge.s32.totalorder %s593_s15, 2 }
  0xc2   : > { %s299_s23 = scalar_lea.sflag [#allocation4], %s298_s18 }
  0xc3   : > { %p418_p13 = pnand %p780_p12, %p655_p6 }
  0xc5   : > { %p419_p0 = pneg %p418_p13 }
  0xc7   : > { %576 = dma.done.wait (%p419_p0), %s299_s23, 512  }
  0xc8   : > { %578 = vsyncadd (%p419_p0), %s299_s23, 4294966784  ;;  %p17_p5 = scmp.ge.s32.totalorder %s673_s26, 4   ;;  %s781_s12 = smov %s585_s13 }
  0xc9   : > { %s782_s13 = smov %s589_s14  ;;  %s783_s14 = smov %s685_s4 }
  0xca   : > { %s784_s15 = smov %s673_s26  ;;  %19 = sbr.rel (!%p17_p5) target bundleno = 6 (0x6), region = 81 }
  0xcf   :  { %305 = vsyncpa [#allocation3], 1 }
  0xd0   :  { %307 = vsyncpa [#allocation3 + $0x1], 1 }
  0xd1   :  { %308 = vsyncpa [#allocation6], 1 }
  0xd2   :  { %309 = vsyncpa [#allocation4], 1 }
  0xd3   :  { %311 = vsyncpa [#allocation4 + $0x1], 1 }

</bundles_post_ra>
